<compile_context>
chip_gen: v6e
topology: v6e:2x2x1
jax: 0.10.0
libtpu: 0.0.40
codegen_flags: <defaults>
</compile_context>

<pallas_src>
import math

import jax
import jax.numpy as jnp
from jax.experimental import pallas as pl
from jax.experimental.pallas import tpu as pltpu


_BN_EPS = 0.8        # nn.BatchNorm1d(out_feat, 0.8) -> eps = 0.8
_LRELU_SLOPE = 0.2
_MAX_OUT_TILE = 512  # lanes of the final layer per grid step (multiple of 128)


def _round_up(x, m):
    return ((x + m - 1) // m) * m


def _leaky_relu(v, slope=_LRELU_SLOPE):
    return jnp.where(v > 0, v, slope * v)


def _batchnorm_train(h, gamma, beta, eps=_BN_EPS):
    # PyTorch BatchNorm1d in training mode: batch mean, biased variance.
    mu = jnp.mean(h, axis=0, keepdims=True)
    var = jnp.mean((h - mu) ** 2, axis=0, keepdims=True)
    return (h - mu) * jax.lax.rsqrt(var + eps) * gamma + beta


def _hidden_stack(x, w1, b1, w2, b2, g2, be2, w3, b3, g3, be3):
    """Layers 1-3 -> [B, 128] hidden (tiny; f32 throughout)."""
    h = jnp.dot(x, w1, preferred_element_type=jnp.float32) + b1
    h = _leaky_relu(h)
    h = jnp.dot(h, w2, preferred_element_type=jnp.float32) + b2
    h = _leaky_relu(_batchnorm_train(h, g2, be2))
    h = jnp.dot(h, w3, preferred_element_type=jnp.float32) + b3
    h = _leaky_relu(_batchnorm_train(h, g3, be3))
    return h


def linear_decoder_kernel(
    x_ref,
    w1_ref, b1_ref,
    w2_ref, b2_ref, g2_ref, be2_ref,
    w3_ref, b3_ref, g3_ref, be3_ref,
    w4_ref, b4_ref,
    out_ref,
):
    # Recompute the tiny hidden stack every grid step: keeps the out-dim axis
    # embarrassingly parallel (safe for megacore sharding on v7x) and costs
    # only a few small MXU/VPU ops on resident VMEM operands.
    h = _hidden_stack(
        x_ref[...],
        w1_ref[...], b1_ref[...],
        w2_ref[...], b2_ref[...], g2_ref[...], be2_ref[...],
        w3_ref[...], b3_ref[...], g3_ref[...], be3_ref[...],
    )
    # Final layer tile: bf16 x bf16 on the MXU, f32 accumulate, f32 bias/output.
    out_ref[...] = (
        jnp.dot(h.astype(w4_ref.dtype), w4_ref[...],
                preferred_element_type=jnp.float32)
        + b4_ref[...]
    )


def init_params(key, latent_dim, output_shape):
    """PyTorch-default-style deterministic init (uniform +-1/sqrt(fan_in))."""
    out_dim = int(math.prod(output_shape))
    dims = [(latent_dim, 16), (16, 64), (64, 128), (128, out_dim)]
    params = {}
    keys = jax.random.split(key, 2 * len(dims))
    for i, (fin, fout) in enumerate(dims):
        bound = 1.0 / math.sqrt(fin)
        # stored as [in, out] (already transposed vs. PyTorch's [out, in])
        params[f"w{i + 1}"] = jax.random.uniform(
            keys[2 * i], (fin, fout), jnp.float32, -bound, bound
        )
        params[f"b{i + 1}"] = jax.random.uniform(
            keys[2 * i + 1], (1, fout), jnp.float32, -bound, bound
        )
    # BatchNorm affine params (PyTorch default: weight=1, bias=0)
    params["g2"] = jnp.ones((1, 64), jnp.float32)
    params["be2"] = jnp.zeros((1, 64), jnp.float32)
    params["g3"] = jnp.ones((1, 128), jnp.float32)
    params["be3"] = jnp.zeros((1, 128), jnp.float32)
    return params


def linear_decoder_forward(latent_variables, params, output_shape,
                           *, max_out_tile=_MAX_OUT_TILE):
    B, latent_dim = latent_variables.shape
    out_dim = int(math.prod(output_shape))

    # Lane-dense output tiling: tile is a multiple of 128, out_dim padded up to
    # a multiple of the tile (padding sliced off after the call).
    out_tile = min(max_out_tile, _round_up(out_dim, 128))
    out_dim_p = _round_up(out_dim, out_tile)
    n_tiles = out_dim_p // out_tile

    # Only large weight -> bf16 (halves the dominant HBM traffic).
    w4 = params["w4"].astype(jnp.bfloat16)
    b4 = params["b4"]
    if out_dim_p != out_dim:
        pad = out_dim_p - out_dim
        w4 = jnp.pad(w4, ((0, 0), (0, pad)))
        b4 = jnp.pad(b4, ((0, 0), (0, pad)))

    operands = (
        latent_variables,
        params["w1"], params["b1"],
        params["w2"], params["b2"], params["g2"], params["be2"],
        params["w3"], params["b3"], params["g3"], params["be3"],
        w4, b4,
    )

    def resident(arr):
        # Full-array block + constant index map: DMA'd once, stays in VMEM
        # across all out-dim grid steps.
        return pl.BlockSpec(arr.shape, lambda j: (0,) * arr.ndim)

    in_specs = [
        resident(latent_variables),
        resident(params["w1"]), resident(params["b1"]),
        resident(params["w2"]), resident(params["b2"]),
        resident(params["g2"]), resident(params["be2"]),
        resident(params["w3"]), resident(params["b3"]),
        resident(params["g3"]), resident(params["be3"]),
        pl.BlockSpec((128, out_tile), lambda j: (0, j)),  # w4 tile (bf16)
        pl.BlockSpec((1, out_tile), lambda j: (0, j)),    # b4 tile
    ]
    out_spec = pl.BlockSpec((B, out_tile), lambda j: (0, j))

    hidden_flops = 2 * B * (latent_dim * 16 + 16 * 64 + 64 * 128)
    cost = pl.CostEstimate(
        flops=hidden_flops * n_tiles + 2 * B * 128 * out_dim_p,
        transcendentals=B * (64 + 128) * n_tiles,
        bytes_accessed=sum(int(o.size) * o.dtype.itemsize for o in operands)
        + B * out_dim_p * 4,
    )

    out_padded = pl.pallas_call(
        linear_decoder_kernel,
        out_shape=jax.ShapeDtypeStruct((B, out_dim_p), jnp.float32),
        grid=(n_tiles,),
        in_specs=in_specs,
        out_specs=out_spec,
        compiler_params=pltpu.CompilerParams(
            dimension_semantics=("parallel",),
        ),
        cost_estimate=cost,
    )(*operands)

    return out_padded[:, :out_dim]


def reference_forward(latent_variables, params):
    """Pure-JAX reference of the same forward pass (bf16 w4, f32 accumulate)."""
    h = _hidden_stack(
        latent_variables,
        params["w1"], params["b1"],
        params["w2"], params["b2"], params["g2"], params["be2"],
        params["w3"], params["b3"], params["g3"], params["be3"],
    )
    w4 = params["w4"].astype(jnp.bfloat16)
    return (
        jnp.dot(h.astype(jnp.bfloat16), w4, preferred_element_type=jnp.float32)
        + params["b4"]
    )


if __name__ == "__main__":
    B = 8
    latent_dim = 32
    output_shape = (3, 16, 16)  # prod = 768 -> 2 out-tiles of 512, exercises lane padding

    key = jax.random.PRNGKey(0)
    k_x, k_p = jax.random.split(key)
    latent = jax.random.normal(k_x, (B, latent_dim), jnp.float32)
    params = init_params(k_p, latent_dim, output_shape)

    out = linear_decoder_forward(latent, params, output_shape)
    out = jax.block_until_ready(out)

    ref = reference_forward(latent, params)
    out_dim = int(math.prod(output_shape))
    assert out.shape == (B, out_dim)
    assert jnp.allclose(out, ref, atol=1e-2, rtol=1e-2)

    print("KERNEL_OK")
</pallas_src>

<mosaic_0001>
module attributes {stable_mosaic.version = 11 : i64} {
  func.func @linear_decoder_kernel(%arg0: i32, %arg1: memref<8x32xf32, #tpu.memory_space<vmem>>, %arg2: memref<32x16xf32, #tpu.memory_space<vmem>>, %arg3: memref<1x16xf32, #tpu.memory_space<vmem>>, %arg4: memref<16x64xf32, #tpu.memory_space<vmem>>, %arg5: memref<1x64xf32, #tpu.memory_space<vmem>>, %arg6: memref<1x64xf32, #tpu.memory_space<vmem>>, %arg7: memref<1x64xf32, #tpu.memory_space<vmem>>, %arg8: memref<64x128xf32, #tpu.memory_space<vmem>>, %arg9: memref<1x128xf32, #tpu.memory_space<vmem>>, %arg10: memref<1x128xf32, #tpu.memory_space<vmem>>, %arg11: memref<1x128xf32, #tpu.memory_space<vmem>>, %arg12: memref<128x512xbf16, #tpu.memory_space<vmem>>, %arg13: memref<1x512xf32, #tpu.memory_space<vmem>>, %arg14: memref<8x512xf32, #tpu.memory_space<vmem>>) attributes {dimension_semantics = [#tpu.dimension_semantics<parallel>], iteration_bounds = array<i64: 2>, scalar_prefetch = 0 : i64, scratch_operands = 0 : i64, tpu.core_type = #tpu.core_type<tc>, window_params = [{pipeline_mode = #tpu.pipeline_mode<synchronous>, transform_indices = @transform_0, window_bounds = array<i64: 8, 32>}, {pipeline_mode = #tpu.pipeline_mode<synchronous>, transform_indices = @transform_1, window_bounds = array<i64: 32, 16>}, {pipeline_mode = #tpu.pipeline_mode<synchronous>, transform_indices = @transform_2, window_bounds = array<i64: 1, 16>}, {pipeline_mode = #tpu.pipeline_mode<synchronous>, transform_indices = @transform_3, window_bounds = array<i64: 16, 64>}, {pipeline_mode = #tpu.pipeline_mode<synchronous>, transform_indices = @transform_4, window_bounds = array<i64: 1, 64>}, {pipeline_mode = #tpu.pipeline_mode<synchronous>, transform_indices = @transform_5, window_bounds = array<i64: 1, 64>}, {pipeline_mode = #tpu.pipeline_mode<synchronous>, transform_indices = @transform_6, window_bounds = array<i64: 1, 64>}, {pipeline_mode = #tpu.pipeline_mode<synchronous>, transform_indices = @transform_7, window_bounds = array<i64: 64, 128>}, {pipeline_mode = #tpu.pipeline_mode<synchronous>, transform_indices = @transform_8, window_bounds = array<i64: 1, 128>}, {pipeline_mode = #tpu.pipeline_mode<synchronous>, transform_indices = @transform_9, window_bounds = array<i64: 1, 128>}, {pipeline_mode = #tpu.pipeline_mode<synchronous>, transform_indices = @transform_10, window_bounds = array<i64: 1, 128>}, {transform_indices = @transform_11, window_bounds = array<i64: 128, 512>}, {transform_indices = @transform_12, window_bounds = array<i64: 1, 512>}, {transform_indices = @transform_13, window_bounds = array<i64: 8, 512>}]} {
    %c0 = arith.constant 0 : index
    %c0_0 = arith.constant 0 : index
    %0 = vector.load %arg1[%c0, %c0_0] : memref<8x32xf32, #tpu.memory_space<vmem>>, vector<8x32xf32>
    %c0_1 = arith.constant 0 : index
    %c0_2 = arith.constant 0 : index
    %1 = vector.load %arg2[%c0_1, %c0_2] : memref<32x16xf32, #tpu.memory_space<vmem>>, vector<32x16xf32>
    %c0_3 = arith.constant 0 : index
    %c0_4 = arith.constant 0 : index
    %2 = vector.load %arg3[%c0_3, %c0_4] : memref<1x16xf32, #tpu.memory_space<vmem>>, vector<1x16xf32>
    %c0_5 = arith.constant 0 : index
    %c0_6 = arith.constant 0 : index
    %3 = vector.load %arg4[%c0_5, %c0_6] : memref<16x64xf32, #tpu.memory_space<vmem>>, vector<16x64xf32>
    %c0_7 = arith.constant 0 : index
    %c0_8 = arith.constant 0 : index
    %4 = vector.load %arg5[%c0_7, %c0_8] : memref<1x64xf32, #tpu.memory_space<vmem>>, vector<1x64xf32>
    %c0_9 = arith.constant 0 : index
    %c0_10 = arith.constant 0 : index
    %5 = vector.load %arg6[%c0_9, %c0_10] : memref<1x64xf32, #tpu.memory_space<vmem>>, vector<1x64xf32>
    %c0_11 = arith.constant 0 : index
    %c0_12 = arith.constant 0 : index
    %6 = vector.load %arg7[%c0_11, %c0_12] : memref<1x64xf32, #tpu.memory_space<vmem>>, vector<1x64xf32>
    %c0_13 = arith.constant 0 : index
    %c0_14 = arith.constant 0 : index
    %7 = vector.load %arg8[%c0_13, %c0_14] : memref<64x128xf32, #tpu.memory_space<vmem>>, vector<64x128xf32>
    %c0_15 = arith.constant 0 : index
    %c0_16 = arith.constant 0 : index
    %8 = vector.load %arg9[%c0_15, %c0_16] : memref<1x128xf32, #tpu.memory_space<vmem>>, vector<1x128xf32>
    %c0_17 = arith.constant 0 : index
    %c0_18 = arith.constant 0 : index
    %9 = vector.load %arg10[%c0_17, %c0_18] : memref<1x128xf32, #tpu.memory_space<vmem>>, vector<1x128xf32>
    %c0_19 = arith.constant 0 : index
    %c0_20 = arith.constant 0 : index
    %10 = vector.load %arg11[%c0_19, %c0_20] : memref<1x128xf32, #tpu.memory_space<vmem>>, vector<1x128xf32>
    %cst = arith.constant dense<0.000000e+00> : vector<8x16xf32>
    %11 = tpu.matmul %0, %1, %cst {dimension_numbers = #tpu.dot_dimension_numbers<[1], [0], [0], [1], [0, 0, 1, 1], [], []>} : vector<8x32xf32>, vector<32x16xf32>, vector<8x16xf32> -> vector<8x16xf32>
    %12 = vector.broadcast %2 : vector<1x16xf32> to vector<8x16xf32>
    %13 = arith.addf %11, %12 : vector<8x16xf32>
    %cst_21 = arith.constant 0.000000e+00 : f32
    %14 = vector.broadcast %cst_21 : f32 to vector<8x16xf32>
    %15 = arith.cmpf ogt, %13, %14 : vector<8x16xf32>
    %cst_22 = arith.constant 2.000000e-01 : f32
    %16 = vector.broadcast %cst_22 : f32 to vector<8x16xf32>
    %17 = arith.mulf %16, %13 : vector<8x16xf32>
    %18 = arith.select %15, %13, %17 : vector<8x16xi1>, vector<8x16xf32>
    %cst_23 = arith.constant dense<0.000000e+00> : vector<8x64xf32>
    %19 = tpu.matmul %18, %3, %cst_23 {dimension_numbers = #tpu.dot_dimension_numbers<[1], [0], [0], [1], [0, 0, 1, 1], [], []>} : vector<8x16xf32>, vector<16x64xf32>, vector<8x64xf32> -> vector<8x64xf32>
    %20 = vector.broadcast %4 : vector<1x64xf32> to vector<8x64xf32>
    %21 = arith.addf %19, %20 : vector<8x64xf32>
    %cst_24 = arith.constant dense<0.000000e+00> : vector<64xf32>
    %22 = vector.multi_reduction <add>, %21, %cst_24 [0] : vector<8x64xf32> to vector<64xf32>
    %23 = vector.shape_cast %22 : vector<64xf32> to vector<1x64xf32>
    %cst_25 = arith.constant 8.000000e+00 : f32
    %24 = vector.broadcast %cst_25 : f32 to vector<1x64xf32>
    %25 = arith.divf %23, %24 : vector<1x64xf32>
    %26 = vector.broadcast %25 : vector<1x64xf32> to vector<8x64xf32>
    %27 = arith.subf %21, %26 : vector<8x64xf32>
    %28 = arith.mulf %27, %27 : vector<8x64xf32>
    %cst_26 = arith.constant dense<0.000000e+00> : vector<64xf32>
    %29 = vector.multi_reduction <add>, %28, %cst_26 [0] : vector<8x64xf32> to vector<64xf32>
    %30 = vector.shape_cast %29 : vector<64xf32> to vector<1x64xf32>
    %cst_27 = arith.constant 8.000000e+00 : f32
    %31 = vector.broadcast %cst_27 : f32 to vector<1x64xf32>
    %32 = arith.divf %30, %31 : vector<1x64xf32>
    %33 = vector.broadcast %25 : vector<1x64xf32> to vector<8x64xf32>
    %34 = arith.subf %21, %33 : vector<8x64xf32>
    %cst_28 = arith.constant 8.000000e-01 : f32
    %35 = vector.broadcast %cst_28 : f32 to vector<1x64xf32>
    %36 = arith.addf %32, %35 : vector<1x64xf32>
    %37 = math.rsqrt %36 : vector<1x64xf32>
    %38 = vector.broadcast %37 : vector<1x64xf32> to vector<8x64xf32>
    %39 = arith.mulf %34, %38 : vector<8x64xf32>
    %40 = vector.broadcast %5 : vector<1x64xf32> to vector<8x64xf32>
    %41 = arith.mulf %39, %40 : vector<8x64xf32>
    %42 = vector.broadcast %6 : vector<1x64xf32> to vector<8x64xf32>
    %43 = arith.addf %41, %42 : vector<8x64xf32>
    %cst_29 = arith.constant 0.000000e+00 : f32
    %44 = vector.broadcast %cst_29 : f32 to vector<8x64xf32>
    %45 = arith.cmpf ogt, %43, %44 : vector<8x64xf32>
    %cst_30 = arith.constant 2.000000e-01 : f32
    %46 = vector.broadcast %cst_30 : f32 to vector<8x64xf32>
    %47 = arith.mulf %46, %43 : vector<8x64xf32>
    %48 = arith.select %45, %43, %47 : vector<8x64xi1>, vector<8x64xf32>
    %cst_31 = arith.constant dense<0.000000e+00> : vector<8x128xf32>
    %49 = tpu.matmul %48, %7, %cst_31 {dimension_numbers = #tpu.dot_dimension_numbers<[1], [0], [0], [1], [0, 0, 1, 1], [], []>} : vector<8x64xf32>, vector<64x128xf32>, vector<8x128xf32> -> vector<8x128xf32>
    %50 = vector.broadcast %8 : vector<1x128xf32> to vector<8x128xf32>
    %51 = arith.addf %49, %50 : vector<8x128xf32>
    %cst_32 = arith.constant dense<0.000000e+00> : vector<128xf32>
    %52 = vector.multi_reduction <add>, %51, %cst_32 [0] : vector<8x128xf32> to vector<128xf32>
    %53 = vector.shape_cast %52 : vector<128xf32> to vector<1x128xf32>
    %cst_33 = arith.constant 8.000000e+00 : f32
    %54 = vector.broadcast %cst_33 : f32 to vector<1x128xf32>
    %55 = arith.divf %53, %54 : vector<1x128xf32>
    %56 = vector.broadcast %55 : vector<1x128xf32> to vector<8x128xf32>
    %57 = arith.subf %51, %56 : vector<8x128xf32>
    %58 = arith.mulf %57, %57 : vector<8x128xf32>
    %cst_34 = arith.constant dense<0.000000e+00> : vector<128xf32>
    %59 = vector.multi_reduction <add>, %58, %cst_34 [0] : vector<8x128xf32> to vector<128xf32>
    %60 = vector.shape_cast %59 : vector<128xf32> to vector<1x128xf32>
    %cst_35 = arith.constant 8.000000e+00 : f32
    %61 = vector.broadcast %cst_35 : f32 to vector<1x128xf32>
    %62 = arith.divf %60, %61 : vector<1x128xf32>
    %63 = vector.broadcast %55 : vector<1x128xf32> to vector<8x128xf32>
    %64 = arith.subf %51, %63 : vector<8x128xf32>
    %cst_36 = arith.constant 8.000000e-01 : f32
    %65 = vector.broadcast %cst_36 : f32 to vector<1x128xf32>
    %66 = arith.addf %62, %65 : vector<1x128xf32>
    %67 = math.rsqrt %66 : vector<1x128xf32>
    %68 = vector.broadcast %67 : vector<1x128xf32> to vector<8x128xf32>
    %69 = arith.mulf %64, %68 : vector<8x128xf32>
    %70 = vector.broadcast %9 : vector<1x128xf32> to vector<8x128xf32>
    %71 = arith.mulf %69, %70 : vector<8x128xf32>
    %72 = vector.broadcast %10 : vector<1x128xf32> to vector<8x128xf32>
    %73 = arith.addf %71, %72 : vector<8x128xf32>
    %cst_37 = arith.constant 0.000000e+00 : f32
    %74 = vector.broadcast %cst_37 : f32 to vector<8x128xf32>
    %75 = arith.cmpf ogt, %73, %74 : vector<8x128xf32>
    %cst_38 = arith.constant 2.000000e-01 : f32
    %76 = vector.broadcast %cst_38 : f32 to vector<8x128xf32>
    %77 = arith.mulf %76, %73 : vector<8x128xf32>
    %78 = arith.select %75, %73, %77 : vector<8x128xi1>, vector<8x128xf32>
    %79 = arith.truncf %78 : vector<8x128xf32> to vector<8x128xbf16>
    %c0_39 = arith.constant 0 : index
    %c0_40 = arith.constant 0 : index
    %80 = vector.load %arg12[%c0_39, %c0_40] : memref<128x512xbf16, #tpu.memory_space<vmem>>, vector<128x512xbf16>
    %cst_41 = arith.constant dense<0.000000e+00> : vector<8x512xf32>
    %81 = tpu.matmul %79, %80, %cst_41 {dimension_numbers = #tpu.dot_dimension_numbers<[1], [0], [0], [1], [0, 0, 1, 1], [], []>} : vector<8x128xbf16>, vector<128x512xbf16>, vector<8x512xf32> -> vector<8x512xf32>
    %c0_42 = arith.constant 0 : index
    %c0_43 = arith.constant 0 : index
    %82 = vector.load %arg13[%c0_42, %c0_43] : memref<1x512xf32, #tpu.memory_space<vmem>>, vector<1x512xf32>
    %83 = vector.broadcast %82 : vector<1x512xf32> to vector<8x512xf32>
    %84 = arith.addf %81, %83 : vector<8x512xf32>
    %c0_44 = arith.constant 0 : index
    %c0_45 = arith.constant 0 : index
    %85 = vector.load %arg14[%c0_44, %c0_45] : memref<8x512xf32, #tpu.memory_space<vmem>>, vector<8x512xf32>
    tpu.vector_store %arg14[%c0_44, %c0_45], %84 {strides = array<i32>} : memref<8x512xf32, #tpu.memory_space<vmem>>, vector<8x512xf32>,
    return
  }
  func.func @transform_0(%arg0: i32) -> (i32, i32) {
    %c0_i32 = arith.constant 0 : i32
    %c0_i32_0 = arith.constant 0 : i32
    %c0_i32_1 = arith.constant 0 : i32
    return %c0_i32, %c0_i32_0 : i32, i32
  }
  func.func @transform_1(%arg0: i32) -> (i32, i32) {
    %c0_i32 = arith.constant 0 : i32
    %c0_i32_0 = arith.constant 0 : i32
    %c0_i32_1 = arith.constant 0 : i32
    return %c0_i32, %c0_i32_0 : i32, i32
  }
  func.func @transform_2(%arg0: i32) -> (i32, i32) {
    %c0_i32 = arith.constant 0 : i32
    %c0_i32_0 = arith.constant 0 : i32
    %c0_i32_1 = arith.constant 0 : i32
    return %c0_i32, %c0_i32_0 : i32, i32
  }
  func.func @transform_3(%arg0: i32) -> (i32, i32) {
    %c0_i32 = arith.constant 0 : i32
    %c0_i32_0 = arith.constant 0 : i32
    %c0_i32_1 = arith.constant 0 : i32
    return %c0_i32, %c0_i32_0 : i32, i32
  }
  func.func @transform_4(%arg0: i32) -> (i32, i32) {
    %c0_i32 = arith.constant 0 : i32
    %c0_i32_0 = arith.constant 0 : i32
    %c0_i32_1 = arith.constant 0 : i32
    return %c0_i32, %c0_i32_0 : i32, i32
  }
  func.func @transform_5(%arg0: i32) -> (i32, i32) {
    %c0_i32 = arith.constant 0 : i32
    %c0_i32_0 = arith.constant 0 : i32
    %c0_i32_1 = arith.constant 0 : i32
    return %c0_i32, %c0_i32_0 : i32, i32
  }
  func.func @transform_6(%arg0: i32) -> (i32, i32) {
    %c0_i32 = arith.constant 0 : i32
    %c0_i32_0 = arith.constant 0 : i32
    %c0_i32_1 = arith.constant 0 : i32
    return %c0_i32, %c0_i32_0 : i32, i32
  }
  func.func @transform_7(%arg0: i32) -> (i32, i32) {
    %c0_i32 = arith.constant 0 : i32
    %c0_i32_0 = arith.constant 0 : i32
    %c0_i32_1 = arith.constant 0 : i32
    return %c0_i32, %c0_i32_0 : i32, i32
  }
  func.func @transform_8(%arg0: i32) -> (i32, i32) {
    %c0_i32 = arith.constant 0 : i32
    %c0_i32_0 = arith.constant 0 : i32
    %c0_i32_1 = arith.constant 0 : i32
    return %c0_i32, %c0_i32_0 : i32, i32
  }
  func.func @transform_9(%arg0: i32) -> (i32, i32) {
    %c0_i32 = arith.constant 0 : i32
    %c0_i32_0 = arith.constant 0 : i32
    %c0_i32_1 = arith.constant 0 : i32
    return %c0_i32, %c0_i32_0 : i32, i32
  }
  func.func @transform_10(%arg0: i32) -> (i32, i32) {
    %c0_i32 = arith.constant 0 : i32
    %c0_i32_0 = arith.constant 0 : i32
    %c0_i32_1 = arith.constant 0 : i32
    return %c0_i32, %c0_i32_0 : i32, i32
  }
  func.func @transform_11(%arg0: i32) -> (i32, i32) {
    %c0_i32 = arith.constant 0 : i32
    %c0_i32_0 = arith.constant 0 : i32
    return %c0_i32, %arg0 : i32, i32
  }
  func.func @transform_12(%arg0: i32) -> (i32, i32) {
    %c0_i32 = arith.constant 0 : i32
    %c0_i32_0 = arith.constant 0 : i32
    return %c0_i32, %arg0 : i32, i32
  }
  func.func @transform_13(%arg0: i32) -> (i32, i32) {
    %c0_i32 = arith.constant 0 : i32
    %c0_i32_0 = arith.constant 0 : i32
    return %c0_i32, %arg0 : i32, i32
  }
}

</mosaic_0001>

<bundles_post_ra>
// kernel: tpu_custom_call.1
= control target key start
LH: loop header
LB: loop body
LE: loop exit
PB: predicated region body
PF: predicated region fallthrough
CT: control target
= control target key end

     0   :  { %s1948_s0 = inlined_call_operand.vmem [shape: f32[8,32], index: 0, kind: input, shape index: {}]   ;;  %s1949_s1 = inlined_call_operand.vmem [shape: f32[32,16], index: 1, kind: input, shape index: {}]   ;;  %s1950_s2 = inlined_call_operand.vmem [shape: f32[1,16], index: 2, kind: input, shape index: {}]   ;;  %s1951_s3 = inlined_call_operand.vmem [shape: f32[16,64], index: 3, kind: input, shape index: {}]   ;;  %s1952_s4 = inlined_call_operand.vmem [shape: f32[1,64], index: 4, kind: input, shape index: {}]   ;;  %s1953_s5 = inlined_call_operand.vmem [shape: f32[1,64], index: 5, kind: input, shape index: {}]   ;;  %s1954_s6 = inlined_call_operand.vmem [shape: f32[1,64], index: 6, kind: input, shape index: {}]   ;;  %s1955_s7 = inlined_call_operand.hbm [shape: f32[64,128], index: 7, kind: input, shape index: {}]   ;;  %s1956_s8 = inlined_call_operand.vmem [shape: f32[1,128], index: 8, kind: input, shape index: {}]   ;;  %s1957_s9 = inlined_call_operand.vmem [shape: f32[1,128], index: 9, kind: input, shape index: {}]   ;;  %s1958_s10 = inlined_call_operand.vmem [shape: f32[1,128], index: 10, kind: input, shape index: {}]   ;;  %s1959_s11 = inlined_call_operand.hbm [shape: bf16[128,1024], index: 11, kind: input, shape index: {}]   ;;  %s1960_s12 = inlined_call_operand.vmem [shape: f32[1,1024], index: 12, kind: input, shape index: {}]   ;;  %s1961_s13 = inlined_call_operand.hbm [shape: f32[8,1024], index: 13, kind: output, shape index: {}]  }
   0x1   :  { %1974 = sst [smem:[#allocation17_spill]] %s1960_s12 }
   0x2   :  { %1975 = sst [smem:[#allocation18_spill]] %s1961_s13 }
   0x3   :  { %18 = vsyncpa [#allocation3], 0 }
   0x4   :  { %19 = vsyncpa [#allocation6], 0 }
   0x5   :  { %21 = vsyncpa [#allocation6 + $0x1], 0 }
   0x6   :  { %22 = vsyncpa [#allocation4], 0 }
   0x7   :  { %24 = vsyncpa [#allocation4 + $0x1], 0  ;;  %s1680_s25 = smov 0   ;;  %s1682_s26 = smov 0  }
   0x8   :  { %s1684_s27 = smov 0   ;;  %s1686_s28 = smov 0  }
   0x9 LB: > { %1976 = sst [smem:[#allocation11_spill]] %s1585_s25  ;;  %s1701_s29 = sadd.s32 4294967295, %s1597_s28   ;;  %s1597_s28 = sphi %s1686_s28, %s2001_s28   ;;  %s1593_s27 = sphi %s1684_s27, %s2003_s27   ;;  %s1589_s26 = sphi %s1682_s26, %s2005_s26   ;;  %s1585_s25 = sphi %s1680_s25, %s2004_s25  }
   0xa   : > { %1977 = sst [smem:[#allocation12_spill]] %s1593_s27  ;;  %s1243_s30 = sadd.s32 4294967294, %s1597_s28  }
   0xb   : > { %s1705_s14 = sadd.s32 1, %s1597_s28   ;;  %s268_s15 = sadd.s32 1, %s1593_s27 }
   0xc   : > { %1978 = sst [smem:[#allocation13_spill]] %s1705_s14  ;;  %s265_s16 = ssub.s32 %s1597_s28, %s1705_s14 }
   0xd   : > { %p275_p0 = scmp.ne.s32.totalorder %s1593_s27, %s1589_s26  ;;  %p266_p1 = scmp.eq.s32.totalorder %s265_s16, 0 }
   0xe   : > { %p276_p2 = scmp.eq.s32.totalorder %s1597_s28, 0  ;;  %p281_p3 = scmp.ne.s32.totalorder %s1589_s26, %s1585_s25 }
   0xf   : > { %p1973_p4 = scmp.eq.s32.totalorder %s1701_s29, 0  ;;  %p331_p7 = scmp.eq.s32.totalorder %s1701_s29, 1 }
  0x10   : > { %s1717_s17 = scalar_select %p266_p1, %s1593_s27, %s268_s15  }
  0x11   : > { %p1719_p5 = por %p276_p2, %p275_p0  ;;  %p1725_p6 = por %p1973_p4, %p281_p3 }
  0x12   : > { %1979 = sst [smem:[#allocation14_spill]] %s1717_s17  ;;  %p337_p8 = scmp.eq.s32.totalorder %s1243_s30, 1 }
  0x13   : > { %s1981_s19 = scalar_select %p1725_p6, 1, 0 }
  0x14   : > { %p1244_p9 = scmp.ge.s32.totalorder %s1597_s28, 1  ;;  %p344_p10 = scmp.lt.s32.totalorder %s1597_s28, 3 }
  0x15   : > { %p1732_p11 = por %p331_p7, %p275_p0  ;;  %p1736_p12 = por %p337_p8, %p281_p3 }
  0x16   : > { %p1740_p13 = pnand %p1244_p9, %p344_p10  ;;  %s1599_s23 = smov [#allocation2]  }
  0x17   : > { %s1982_s20 = scalar_select %p1732_p11, 1, 0 }
  0x18   : > { %s1984_s21 = scalar_select %p1736_p12, 1, 0 }
  0x19   : > { %1983 = sst [smem:[#allocation15_spill]] %s1982_s20  ;;  %p1366_p1 = pneg %p1740_p13 }
  0x1a   : > { %1985 = sst [smem:[#allocation16_spill]] %s1984_s21  ;;  %s377_s24 = sshll.u32 %s1599_s23, 4  ;;  %s378_s24 = int_to_ptr.vmem [resolvable:$true] %s377_s24 }
  0x1b   : > { %s1986_s22 = scalar_select %p1740_p13, 1, 0 }
  0x1c   : > { %p1748_p2 = pnand %p1366_p1, %p1973_p4  ;;  %p1379_p3 = scmp.lt.s32.totalorder %s1597_s28, 2 }
  0x1d   : > { %s400_s15 = sand.u32 1, %s1593_s27   ;;  %s1486_s16 = scalar_lea.vmem %s378_s24, 1024 }
  0x1e   : > { %p1477_p7 = pneg %p1748_p2  ;;  %p1487_p8 = scmp.ne.s32.totalorder %s378_s24, %s1486_s16 }
  0x1f   : > { %p1494_p12 = scmp.lt.s32.totalorder %s378_s24, %s378_s24  ;;  %p1495_p11 = scmp.lt.s32.totalorder %s1486_s16, %s1486_s16 }
  0x20   : > { %p1489_p9 = pnand %p1487_p8, %p1477_p7 }
  0x21   : > { %p1496_p6 = por %p1495_p11, %p1494_p12 }
  0x22   : > { %p1490_p10 = pneg %p1489_p9 }
  0x24   : > { %p1497_p13 = pnand %p1496_p6, %p1490_p10 }
  0x26   : > { %1500 = shalt.err (!%p1497_p13)
}
  0x27   : > { %s1600_s23 = smov 128   ;;  %s1601_s17 = smov 8  }
  0x28   : > { %1369 = dma.hbm_to_vmem [thread:$0]  (!%p1748_p2), %s1955_s7, 1024, %s378_s24, [#allocation3], %s1600_s23, %s1600_s23, %s1601_s17  }
  0x29   : > { %p1766_p1 = pnand %p1379_p3, %p1719_p5  ;;  %s1247_s16 = sshll.u32 %s400_s15, 8 }
  0x2a   : > { %s1302_s25 = sshll.u32 %s1597_s28, 8  ;;  %s404_s30 = scalar_lea.vmem [#allocation5], %s1247_s16 }
  0x2b   : > { %s1774_s12 = scalar_lea.hbm %s1959_s11, %s1302_s25  ;;  %s411_s27 = sshll.u32 %s404_s30, 4  ;;  %s1776_s27 = int_to_ptr.vmem [resolvable:$true] %s411_s27 }
  0x2c   : > { %s1778_s14 = scalar_lea.sflag [#allocation6], %s400_s15  ;;  %s1501_s17 = scalar_lea.hbm %s1774_s12, 4096 }
  0x2d   : > { %p1502_p5 = scmp.ne.s32.totalorder %s1774_s12, %s1501_s17  ;;  %p1503_p6 = pneg %p1766_p1 }
  0x2e   : > { %s1506_s13 = scalar_lea.hbm %s1959_s11, 8192  ;;  %p1507_p13 = scmp.lt.s32.totalorder %s1774_s12, %s1959_s11 }
  0x2f   : > { %p1504_p11 = pnand %p1503_p6, %p1502_p5  ;;  %p1508_p2 = scmp.lt.s32.totalorder %s1506_s13, %s1501_s17 }
  0x31   : > { %p1505_p12 = pneg %p1504_p11  ;;  %p1509_p3 = por %p1508_p2, %p1507_p13 }
  0x33   : > { %p1510_p7 = pnand %p1509_p3, %p1505_p12 }
  0x35   : > { %1513 = shalt.err (!%p1510_p7)
}
  0x36   : > { %s1514_s15 = scalar_lea.vmem %s1776_s27, 4096  ;;  %s1602_s23 = smov [#allocation5]  }
  0x37   : > { %p1515_p8 = scmp.ne.s32.totalorder %s1776_s27, %s1514_s15  ;;  %s1519_s16 = sshll.u32 %s1602_s23, 4  ;;  %s1520_s16 = int_to_ptr.vmem [resolvable:$false] %s1519_s16 }
  0x38   : > { %s1521_s30 = scalar_lea.vmem %s1520_s16, 8192  ;;  %p1522_p5 = scmp.lt.s32.totalorder %s1776_s27, %s1520_s16 }
  0x39   : > { %p1517_p9 = pnand %p1515_p8, %p1503_p6  ;;  %p1523_p11 = scmp.lt.s32.totalorder %s1521_s30, %s1514_s15 }
  0x3b   : > { %p1518_p10 = pneg %p1517_p9  ;;  %p1524_p0 = por %p1523_p11, %p1522_p5 }
  0x3d   : > { %p1525_p4 = pnand %p1524_p0, %p1518_p10 }
  0x3f   : > { %1528 = shalt.err (!%p1525_p4)
}
  0x40   : > { %s1603_s17 = smov 512   ;;  %s1604_s18 = smov 256  }
  0x41   : > { %s1605_s24 = smov 16   ;;  %p1989_p6 = scmp.ne.s32.totalorder %s1986_s22, 0 }
  0x42   : > { %1373 = dma.hbm_to_vmem [thread:$0]  (!%p1766_p1), %s1774_s12, 4096, %s1776_s27, %s1778_s14, %s1603_s17, %s1604_s18, %s1605_s24  }
  0x43   : > { %431 = sbr.rel (%p1989_p6) target bundleno = 1004 (0x3ec), region = 72  ;;  %p1990_p12 = scmp.eq.s32.totalorder (!%p1989_p6), %s1701_s29, 0 }
  0x48   : > { %1572 = dma.done.wait (%p1990_p12), [#allocation3], 1024   ;;  %p1991_p13 = pmov %p1990_p12 }
  0x49   : > { %s1806_s13 = sand.u32 1, %s1589_s26   ;;  %p1992_p4 = scmp.ne.s32.totalorder %s1981_s19, 0 }
  0x4a   : > { %1574 = vsyncadd (%p1991_p13), [#allocation3], 4294966272  ;;  %s1252_s25 = sshll.u32 %s1806_s13, 8  ;;  %s438_s20 = scalar_lea.sflag [#allocation6], %s1806_s13 }
  0x4b   : > { %s1810_s15 = scalar_lea.vmem [#allocation5], %s1252_s25 }
  0x4c   : > { %1576 = dma.done.wait (%p1992_p4), %s438_s20, 4096  }
  0x4d   : > { %1578 = vsyncadd (%p1992_p4), %s438_s20, 4294963200  ;;  %v1606_v0 = vmov 0.0   ;;  %vm1607_vm0 = vmmov 0   ;;  %v500_v1 = vld [vmem:[%s1949_s1 + $0x18] sm:$0xff]  ;;  %v499_v2 = vld [vmem:[%s1949_s1 + $0x10] sm:$0xff]  ;;  %vm524_vm1 = vcmask 261120  }
  0x4e   : > { %1321 = vmatprep.subr.mxu0 %v1606_v0  ;;  %1329 = vmatprep.mubr.msk.f32.mxu0 %vm1607_vm0, %v1606_v0  ;;  %v498_v3 = vld [vmem:[%s1949_s1 + $0x8] sm:$0xff]  ;;  %v497_v4 = vld [vmem:[%s1949_s1] sm:$0xff]  ;;  %vm607_vm3 = vcmask 130048   ;;  %v514_v14 = vld [vmem:[#allocation2 + $0x38] sm:$0xff]  ;;  %vm681_vm4 = vcmask 523264   ;;  %s1254_s20 = sshll.u32 %s1701_s29, 2 }
  0x4f   : > { %1339 = vmatprep.subr.mxu1 %v1606_v0  ;;  %1355 = vmatprep.mubr.msk.f32.mxu1 %vm1607_vm0, %v1606_v0  ;;  %v496_v5 = vld [vmem:[%s1948_s0] sm:$0xff]  ;;  %v503_v6 = vld [vmem:[%s1951_s3 + $0x8] sm:$0xff]  ;;  %v513_v15 = vld [vmem:[#allocation2 + $0x30] sm:$0xff]  ;;  %p490_p0 = scmp.lt.s32.totalorder %s1254_s20, 7  ;;  %s1993_s22 = sld [smem:[#allocation17_spill]] }
  0x50   : > { %1322 = vmatpush3.msra.mxu0 %v500_v1  ;;  %v502_v7 = vld [vmem:[%s1951_s3] sm:$0xff]  ;;  %1340 = vmatpush3.msra.mxu1 %v514_v14  ;;  %v512_v16 = vld [vmem:[#allocation2 + $0x28] sm:$0xff]  ;;  %v510_v18 = vld [vmem:[#allocation2 + $0x18] sm:$0xff]  ;;  %s1253_s14 = sshll.u32 %s1806_s13, 5  ;;  %s1303_s19 = sshll.u32 %s1701_s29, 9 }
  0x51   : > { %1323 = vmatprep.subr.mxu0 %v1606_v0  ;;  %v1255_v8 = vld [vmem:[%s1950_s2] ss:$0 sm:$0xff]  ;;  %1341 = vmatprep.subr.mxu1 %v1606_v0  ;;  %v509_v19 = vld [vmem:[#allocation2 + $0x10] sm:$0xff]  ;;  %v508_v20 = vld [vmem:[#allocation2 + $0x8] sm:$0xff]  ;;  %s2007_s20 = smov (!%p490_p0, %s1254_s20), 7  ;;  %s487_s23 = scalar_lea.vmem [#allocation7], %s1253_s14 }
  0x52   : > { %1324 = vmatpush3.msra.mxu0 %v499_v2  ;;  %1342 = vmatpush3.msra.mxu1 %v513_v15  ;;  %v511_v17 = vld [vmem:[#allocation2 + $0x20] sm:$0xff]  ;;  %v1428_v54 = vld [vmem:[%s1810_s15 + $0xec] ss:$16 sps:$4 sm:$0xff]   ;;  %v1426_v56 = vld [vmem:[%s1810_s15 + $0xe8] ss:$16 sps:$4 sm:$0xff]   ;;  %s1152_s16 = sshll.u32 %s487_s23, 4  ;;  %s1907_s16 = int_to_ptr.vmem [resolvable:$true] %s1152_s16 }
  0x53   : > { %1325 = vmatprep.subr.mxu0 %v1606_v0  ;;  %1343 = vmatprep.subr.mxu1 %v1606_v0  ;;  %v507_v21 = vld [vmem:[#allocation2] sm:$0xff]  ;;  %v1434_v58 = vld [vmem:[%s1810_s15 + $0xcc] ss:$16 sps:$4 sm:$0xff]   ;;  %v1432_v60 = vld [vmem:[%s1810_s15 + $0xc8] ss:$16 sps:$4 sm:$0xff]   ;;  %s1994_s30 = sld [smem:[#allocation15_spill]] }
  0x54   : > { %1326 = vmatpush3.msra.mxu0 %v498_v3  ;;  %1344 = vmatpush3.msra.mxu1 %v512_v16  ;;  %v1257_v22 = vld [vmem:[%s1952_s4] ss:$0 sm:$0xff]  ;;  %v1425_v53 = vld [vmem:[%s1810_s15 + $0xe4] ss:$16 sps:$4 sm:$0xff]   ;;  %v1440_v62 = vld [vmem:[%s1810_s15 + $0xac] ss:$16 sps:$4 sm:$0xff]  }
  0x55   : > { %1327 = vmatprep.subr.mxu0 %v1606_v0  ;;  %1345 = vmatprep.subr.mxu1 %v1606_v0  ;;  %v1259_v46 = vld [vmem:[%s1953_s5] ss:$0 sm:$0xff]  ;;  %v1431_v57 = vld [vmem:[%s1810_s15 + $0xc4] ss:$16 sps:$4 sm:$0xff]   ;;  %v1446_v2 = vld [vmem:[%s1810_s15 + $0x8c] ss:$16 sps:$4 sm:$0xff]   ;;  %s492_s27 = scalar_lea.vmem %s1993_s22, %s2007_s20 }
  0x56   : > { %1328 = vmatpush3.msra.mxu0 %v497_v4  ;;  %1346 = vmatpush3.msra.mxu1 %v511_v17  ;;  %v1260_v48 = vld [vmem:[%s1954_s6] ss:$0 sm:$0xff]  ;;  %v1437_v61 = vld [vmem:[%s1810_s15 + $0xa4] ss:$16 sps:$4 sm:$0xff]   ;;  %v1444_v4 = vld [vmem:[%s1810_s15 + $0x88] ss:$16 sps:$4 sm:$0xff]  }
  0x57   : > { %1330 = vmatmul.mubr.msk.f32.vlgmr.msra.gmra.mxu0 %vm524_vm1, %v496_v5  ;;  %1332 = vmatprep.subr.mxu0 %v1606_v0  ;;  %v1423_v55 = vld [vmem:[%s1810_s15 + $0xe0] ss:$16 sps:$4 sm:$0xff]   ;;  %v1443_v1 = vld [vmem:[%s1810_s15 + $0x84] ss:$16 sps:$4 sm:$0xff]   ;;  %v1464_v14 = vld [vmem:[%s1810_s15 + $0x2c] ss:$16 sps:$4 sm:$0xff]  }
  0x58   : > { %1336 = vmatprep.mubr.msk.f32.mxu0 %vm1607_vm0, %v1606_v0  ;;  %1333 = vmatpush3.msra.mxu0 %v503_v6  ;;  %v1429_v59 = vld [vmem:[%s1810_s15 + $0xc0] ss:$16 sps:$4 sm:$0xff]   ;;  %v1449_v5 = vld [vmem:[%s1810_s15 + $0x64] ss:$16 sps:$4 sm:$0xff]   ;;  %v1452_v6 = vld [vmem:[%s1810_s15 + $0x6c] ss:$16 sps:$4 sm:$0xff]  }
  0x59   : > { %1334 = vmatprep.subr.mxu0 %v1606_v0  ;;  %1347 = vmatprep.subr.mxu1 %v1606_v0  ;;  %v1435_v63 = vld [vmem:[%s1810_s15 + $0xa0] ss:$16 sps:$4 sm:$0xff]   ;;  %v1462_v16 = vld [vmem:[%s1810_s15 + $0x28] ss:$16 sps:$4 sm:$0xff]   ;;  %s1995_s18 = sld [smem:[#allocation18_spill]]  ;;  %s1138_s29 = scalar_lea.sflag [#allocation4], %s1806_s13 }
  0x5a   : > { %1335 = vmatpush3.msra.mxu0 %v502_v7  ;;  %1348 = vmatpush3.msra.mxu1 %v510_v18  ;;  %v1441_v3 = vld [vmem:[%s1810_s15 + $0x80] ss:$16 sps:$4 sm:$0xff]   ;;  %v1467_v18 = vld [vmem:[%s1810_s15 + $0x4] ss:$16 sps:$4 sm:$0xff]   ;;  %s1529_s25 = scalar_lea.vmem %s1907_s16, 512  ;;  %p1996_p2 = scmp.ne.s32.totalorder %s1994_s30, 0 }
  0x5b   : > { %1349 = vmatprep.subr.mxu1 %v1606_v0  ;;  %1051 = vmatprep.subr.bf16.mxu0 %v1425_v53  ;;  %v1447_v7 = vld [vmem:[%s1810_s15 + $0x60] ss:$16 sps:$4 sm:$0xff]   ;;  %p1530_p1 = scmp.ne.s32.totalorder %s1907_s16, %s1529_s25  ;;  %s1609_s20 = smov [#allocation7]  }
  0x5c   : > { %1350 = vmatpush3.msra.mxu1 %v509_v19  ;;  %v1459_v15 = vld [vmem:[%s1810_s15 + $0x20] ss:$16 sps:$4 sm:$0xff]   ;;  %v1468_v19 = vld [vmem:[%s1810_s15 + $0x8] ss:$16 sps:$4 sm:$0xff]   ;;  %s1533_s12 = sshll.u32 %s1609_s20, 4  ;;  %s1534_s12 = int_to_ptr.vmem [resolvable:$false] %s1533_s12 }
  0x5d   : > { %1351 = vmatprep.subr.mxu1 %v1606_v0  ;;  %v1465_v17 = vld [vmem:[%s1810_s15] ss:$16 sps:$4 sm:$0xff]   ;;  %p1531_p3 = pnand %p1530_p1, %p1996_p2  ;;  %s1535_s21 = scalar_lea.vmem %s1534_s12, 1024 }
  0x5e   : > { %1352 = vmatpush3.msra.mxu1 %v508_v20  ;;  %v1470_v20 = vld [vmem:[%s1810_s15 + $0xc] ss:$16 sps:$4 sm:$0xff]   ;;  %p1536_p8 = scmp.lt.s32.totalorder %s1907_s16, %s1534_s12  ;;  %p1537_p9 = scmp.lt.s32.totalorder %s1535_s21, %s1529_s25 }
  0x5f   : > { %1353 = vmatprep.subr.mxu1 %v1606_v0  ;;  %v1438_v0 = vld [vmem:[%s1810_s15 + $0xa8] ss:$16 sps:$4 sm:$0xff]   ;;  %s1905_s24 = scalar_lea.hbm %s1995_s18, %s1303_s19  ;;  %p1532_p7 = pneg %p1531_p3 }
  0x60   : > { %1354 = vmatpush3.msra.mxu1 %v507_v21  ;;  %v1608_v21 = vmov 0   ;;  %p1538_p10 = por %p1537_p9, %p1536_p8 }
  0x61   : > { %1092 = vmatprep.subr.bf16.mxu1 %v1428_v54 }
  0x62   : > { %p1539_p5 = pnand %p1538_p10, %p1532_p7 }
 0x117   : > { %v594_v9 = vpop.f32.mrf.mxu0 }
 0x118   : > { %v595_v10 = vadd.f32 %v1255_v8, %v594_v9  ;;  %v1450_v8 = vld [vmem:[%s1810_s15 + $0x68] ss:$16 sps:$4 sm:$0xff]   ;;  %v1455_v9 = vld [vmem:[%s1810_s15 + $0x44] ss:$16 sps:$4 sm:$0xff]  }
 0x119   : > { %v1331_v11 = vpop.f32.mrf.mxu0 }
 0x11a   : > { %vm598_vm2 = vcmp.gt.f32.partialorder %v595_v10, 0.0  ;;  %v599_v12 = vmul.f32 0.2, %v595_v10  ;;  %v1453_v11 = vld [vmem:[%s1810_s15 + $0x40] ss:$16 sps:$4 sm:$0xff]  }
 0x11c   : > { %v600_v13 = vsel %vm598_vm2, %v595_v10, %v599_v12  ;;  %v1458_v10 = vld [vmem:[%s1810_s15 + $0x4c] ss:$16 sps:$4 sm:$0xff]   ;;  %v1456_v12 = vld [vmem:[%s1810_s15 + $0x48] ss:$16 sps:$4 sm:$0xff]  }
 0x11d   : > { %1337 = vmatmul.mubr.msk.f32.vlgmr.msra.gmra.mxu0 %vm607_vm3, %v600_v13  ;;  %v1461_v13 = vld [vmem:[%s1810_s15 + $0x24] ss:$16 sps:$4 sm:$0xff]  }
 0x11e   : > { %1052 = vmatpush1.bf16.msra.mxu0 %v1423_v55  ;;  %1083 = vmatprep.mubr.bf16.mxu0 %v1608_v21 }
 0x11f   : > { %1053 = vmatprep.subr.bf16.mxu0 %v1431_v57 }
 0x122   : > { %1054 = vmatpush1.bf16.msra.mxu0 %v1429_v59 }
 0x123   : > { %1055 = vmatprep.subr.bf16.mxu0 %v1437_v61 }
 0x126   : > { %1056 = vmatpush1.bf16.msra.mxu0 %v1435_v63 }
 0x127   : > { %1057 = vmatprep.subr.bf16.mxu0 %v1443_v1 }
 0x12a   : > { %1058 = vmatpush1.bf16.msra.mxu0 %v1441_v3 }
 0x12b   : > { %1059 = vmatprep.subr.bf16.mxu0 %v1449_v5 }
 0x12e   : > { %1060 = vmatpush1.bf16.msra.mxu0 %v1447_v7 }
 0x12f   : > { %1061 = vmatprep.subr.bf16.mxu0 %v1455_v9 }
 0x132   : > { %1062 = vmatpush1.bf16.msra.mxu0 %v1453_v11 }
 0x133   : > { %1063 = vmatprep.subr.bf16.mxu0 %v1461_v13 }
 0x136   : > { %1064 = vmatpush1.bf16.msra.mxu0 %v1459_v15 }
 0x137   : > { %1065 = vmatprep.subr.bf16.mxu0 %v1467_v18 }
 0x13a   : > { %1066 = vmatpush1.bf16.msra.mxu0 %v1465_v17 }
 0x1dd   : > { %v677_v23 = vpop.f32.mrf.mxu0 }
 0x1de   : > { %v678_v24 = vadd.f32 %v1257_v22, %v677_v23  ;;  %v1261_v22 = vld [vmem:[%s1956_s8] ss:$0 sm:$0xff] }
 0x1df   : > { %v1338_v25 = vpop.f32.mrf.mxu0 }
 0x1e0   : > { %v682_v26 = vsel %vm681_vm4, %v678_v24, 0.0 }
 0x1e1   : > { %v683_v27 = vrot.slane %v682_v26, 4 }
 0x1e3   : > { %v684_v28 = vadd.f32 %v683_v27, %v682_v26 }
 0x1e5   : > { %v685_v29 = vrot.slane %v684_v28, 2 }
 0x1e7   : > { %v686_v30 = vadd.f32 %v685_v29, %v684_v28 }
 0x1e9   : > { %v687_v31 = vrot.slane %v686_v30, 1 }
 0x1eb   : > { %v688_v32 = vadd.f32 %v687_v31, %v686_v30 }
 0x1ed   : > { %v690_v33 = vmul.f32 0.125, %v688_v32 }
 0x1ef   : > { %v691_v34 = vsub.f32 %v678_v24, %v690_v33 }
 0x1f1   : > { %v692_v35 = vmul.f32 %v691_v34, %v691_v34 }
 0x1f3   : > { %v693_v36 = vsel %vm681_vm4, %v692_v35, 0.0 }
 0x1f4   : > { %v694_v37 = vrot.slane %v693_v36, 4 }
 0x1f6   : > { %v695_v38 = vadd.f32 %v694_v37, %v693_v36 }
 0x1f8   : > { %v696_v39 = vrot.slane %v695_v38, 2 }
 0x1fa   : > { %v697_v40 = vadd.f32 %v696_v39, %v695_v38 }
 0x1fc   : > { %v698_v41 = vrot.slane %v697_v40, 1 }
 0x1fe   : > { %v699_v42 = vadd.f32 %v698_v41, %v697_v40 }
 0x200   : > { %v700_v43 = vmul.f32 0.125, %v699_v42 }
 0x202   : > { %v701_v44 = vadd.f32 0.8, %v700_v43 }
 0x204   : > { %1471 = vrsqrt.f32 %v701_v44  ;;  %v1263_v44 = vld [vmem:[%s1957_s9] ss:$0 sm:$0xff] }
 0x211   : > { %v1472_v45 = vpop.eup %1471 }
 0x212   : > { %v703_v47 = vmul.f32 %v1472_v45, %v691_v34 }
 0x214   : > { %v710_v49 = vmul.f32 %v1259_v46, %v703_v47  ;;  %v1264_v46 = vld [vmem:[%s1958_s10] ss:$0 sm:$0xff] }
 0x216   : > { %v717_v50 = vadd.f32 %v1260_v48, %v710_v49 }
 0x218   : > { %vm718_vm5 = vcmp.gt.f32.partialorder %v717_v50, 0.0  ;;  %v719_v51 = vmul.f32 0.2, %v717_v50 }
 0x21a   : > { %v720_v52 = vsel %vm718_vm5, %v717_v50, %v719_v51 }
 0x21b   : > { %1356 = vmatmul.mubr.msk.f32.vlgmr.msra.gmra.mxu1 %vm681_vm4, %v720_v52  ;;  %v871_v52 = vlaneseq }
 0x21c   : > { %1093 = vmatpush1.bf16.msra.mxu1 %v1426_v56  ;;  %1124 = vmatprep.mubr.bf16.mxu1 %v1608_v21  ;;  %v869_v56 = vld [vmem:[%s492_s27] sm:$0xf] }
 0x21d   : > { %1094 = vmatprep.subr.bf16.mxu1 %v1434_v58  ;;  %v872_v53 = vshrl.u32 %v871_v52, 7 }
 0x21f   : > { %v873_v54 = vsub.s32 0, %v872_v53  ;;  %v881_v55 = vsub.s32 2, %v872_v53  ;;  %v877_v57 = vsub.s32 1, %v872_v53  ;;  %v885_v58 = vsub.s32 3, %v872_v53 }
 0x220   : > { %1095 = vmatpush1.bf16.msra.mxu1 %v1432_v60 }
 0x221   : > { %1096 = vmatprep.subr.bf16.mxu1 %v1440_v62  ;;  %v874_v59 = vrot.slane %v869_v56, %v873_v54  ;;  %v882_v60 = vrot.slane %v869_v56, %v881_v55  ;;  %v878_v61 = vrot.slane %v869_v56, %v877_v57  ;;  %v886_v62 = vrot.slane %v869_v56, %v885_v58 }
 0x224   : > { %1097 = vmatpush1.bf16.msra.mxu1 %v1438_v0 }
 0x225   : > { %1098 = vmatprep.subr.bf16.mxu1 %v1446_v2 }
 0x228   : > { %1099 = vmatpush1.bf16.msra.mxu1 %v1444_v4 }
 0x229   : > { %1100 = vmatprep.subr.bf16.mxu1 %v1452_v6 }
 0x22c   : > { %1101 = vmatpush1.bf16.msra.mxu1 %v1450_v8 }
 0x22d   : > { %1102 = vmatprep.subr.bf16.mxu1 %v1458_v10 }
 0x230   : > { %1103 = vmatpush1.bf16.msra.mxu1 %v1456_v12 }
 0x231   : > { %1104 = vmatprep.subr.bf16.mxu1 %v1464_v14 }
 0x234   : > { %1105 = vmatpush1.bf16.msra.mxu1 %v1462_v16 }
 0x235   : > { %1106 = vmatprep.subr.bf16.mxu1 %v1470_v20 }
 0x238   : > { %1107 = vmatpush1.bf16.msra.mxu1 %v1468_v19 }
 0x2db   : > { %v796_v23 = vpop.f32.mrf.mxu1 }
 0x2dc   : > { %v797_v24 = vadd.f32 %v1261_v22, %v796_v23 }
 0x2dd   : > { %v1357_v25 = vpop.f32.mrf.mxu1 }
 0x2de   : > { %v800_v26 = vrot.slane %v797_v24, 4 }
 0x2e0   : > { %v801_v27 = vadd.f32 %v800_v26, %v797_v24 }
 0x2e2   : > { %v802_v28 = vrot.slane %v801_v27, 2 }
 0x2e4   : > { %v803_v29 = vadd.f32 %v802_v28, %v801_v27 }
 0x2e6   : > { %v804_v30 = vrot.slane %v803_v29, 1 }
 0x2e8   : > { %v805_v31 = vadd.f32 %v804_v30, %v803_v29 }
 0x2ea   : > { %v806_v32 = vmul.f32 0.125, %v805_v31 }
 0x2ec   : > { %v807_v33 = vsub.f32 %v797_v24, %v806_v32 }
 0x2ee   : > { %v808_v34 = vmul.f32 %v807_v33, %v807_v33 }
 0x2f0   : > { %v809_v35 = vrot.slane %v808_v34, 4 }
 0x2f2   : > { %v810_v36 = vadd.f32 %v809_v35, %v808_v34 }
 0x2f4   : > { %v811_v37 = vrot.slane %v810_v36, 2 }
 0x2f6   : > { %v812_v38 = vadd.f32 %v811_v37, %v810_v36 }
 0x2f8   : > { %v813_v39 = vrot.slane %v812_v38, 1 }
 0x2fa   : > { %v814_v40 = vadd.f32 %v813_v39, %v812_v38 }
 0x2fc   : > { %v815_v41 = vmul.f32 0.125, %v814_v40 }
 0x2fe   : > { %v816_v42 = vadd.f32 0.8, %v815_v41 }
 0x300   : > { %1473 = vrsqrt.f32 %v816_v42 }
 0x30d   : > { %v1474_v43 = vpop.eup %1473 }
 0x30e   : > { %v818_v45 = vmul.f32 %v1474_v43, %v807_v33 }
 0x310   : > { %v825_v47 = vmul.f32 %v1263_v44, %v818_v45 }
 0x312   : > { %v832_v48 = vadd.f32 %v1264_v46, %v825_v47 }
 0x314   : > { %vm833_vm6 = vcmp.gt.f32.partialorder %v832_v48, 0.0  ;;  %v834_v49 = vmul.f32 0.2, %v832_v48 }
 0x316   : > { %v835_v50 = vsel %vm833_vm6, %v832_v48, %v834_v49 }
 0x317   : > { %v836_v51 = vpack.c.bf16 %v835_v50, %v835_v50 }
 0x319   : > { %1084 = vmatmul.mubr.bf16.vlgmr.msra.gmra.mxu0 %v836_v51  ;;  %1125 = vmatmul.mubr.bf16.vlgmr.msra.gmra.mxu1 %v836_v51 }
 0x3d9   : > { %v1085_v63 = vpop.f32.mrf.mxu0  ;;  %v1126_v0 = vpop.f32.mrf.mxu1 }
 0x3da   : > { %v1086_v1 = vadd.f32 %v1085_v63, %v874_v59  ;;  %v1127_v2 = vadd.f32 %v1126_v0, %v882_v60 }
 0x3db   : > { %v1087_v3 = vpop.f32.mrf.mxu0  ;;  %v1128_v4 = vpop.f32.mrf.mxu1 }
 0x3dc   : > { %1133 = vst [vmem:[%s487_s23] sm:$0xff] %v1086_v1  ;;  %1135 = vst [vmem:[%s487_s23 + $0x10] sm:$0xff] %v1127_v2  ;;  %v1088_v5 = vadd.f32 %v1087_v3, %v878_v61  ;;  %v1129_v6 = vadd.f32 %v1128_v4, %v886_v62 }
 0x3dd   : > { %v1089_v7 = vpop.f32.mrf.mxu0  ;;  %v1130_v8 = vpop.f32.mrf.mxu1 }
 0x3de   : > { %1134 = vst [vmem:[%s487_s23 + $0x8] sm:$0xff] %v1088_v5  ;;  %1136 = vst [vmem:[%s487_s23 + $0x18] sm:$0xff] %v1129_v6 }
 0x3df   : > { %v1090_v9 = vpop.f32.mrf.mxu0  ;;  %v1131_v10 = vpop.f32.mrf.mxu1 }
 0x3e0   : > { %1542 = shalt.err (!%p1539_p5)
}
 0x3e1   : > { %s1543_s22 = scalar_lea.hbm %s1905_s24, 512  ;;  %s1547_s14 = scalar_lea.hbm %s1995_s18, 1024 }
 0x3e2   : > { %p1544_p11 = scmp.ne.s32.totalorder %s1905_s24, %s1543_s22  ;;  %p1548_p13 = scmp.lt.s32.totalorder %s1905_s24, %s1995_s18 }
 0x3e3   : > { %p1549_p4 = scmp.lt.s32.totalorder %s1547_s14, %s1543_s22 }
 0x3e4   : > { %p1545_p6 = pnand %p1544_p11, %p1996_p2 }
 0x3e5   : > { %p1550_p0 = por %p1549_p4, %p1548_p13 }
 0x3e6   : > { %p1546_p12 = pneg %p1545_p6 }
 0x3e8   : > { %p1551_p1 = pnand %p1550_p0, %p1546_p12 }
 0x3ea   : > { %1554 = shalt.err (!%p1551_p1)
}
 0x3eb   : > { %1364 = dma.vmem_to_hbm [thread:$0]  (%p1996_p2), %s1907_s16, 512, %s1905_s24, %s1138_s29  }
 0x3ec PF: > { %s1997_s17 = sld [smem:[#allocation11_spill]]  ;;  %p2000_p7 = scmp.ge.s32.totalorder %s1597_s28, 2 }
 0x3ed   : > { %s1998_s15 = sld [smem:[#allocation16_spill]] }
 0x3f2   : > { %s1164_s25 = sand.u32 1, %s1997_s17  }
 0x3f3   : > { %p1999_p3 = scmp.ne.s32.totalorder %s1998_s15, 0  ;;  %s1165_s20 = scalar_lea.sflag [#allocation4], %s1164_s25 }
 0x3f5   : > { %p1375_p8 = pnand %p2000_p7, %p1999_p3 }
 0x3f7   : > { %p1376_p9 = pneg %p1375_p8 }
 0x3f9   : > { %1580 = dma.done.wait (%p1376_p9), %s1165_s20, 512  }
 0x3fa   : > { %1582 = vsyncadd (%p1376_p9), %s1165_s20, 4294966784  ;;  %s2001_s28 = sld [smem:[#allocation13_spill]]  ;;  %s2004_s25 = smov %s1589_s26 }
 0x3fb   : > { %s2002_s12 = sld [smem:[#allocation12_spill]] }
 0x3fc   : > { %s2003_s27 = sld [smem:[#allocation14_spill]] }
 0x400   : > { %p27_p10 = scmp.ge.s32.totalorder %s2001_s28, 4  }
 0x401   : > { %s2005_s26 = smov %s2002_s12 }
 0x402   :  { %29 = sbr.rel (!%p27_p10) target bundleno = 9 (0x9), region = 125 }
 0x407   :  { %1170 = vsyncpa [#allocation3], 1 }
 0x408   :  { %1172 = vsyncpa [#allocation3 + $0x1], 1 }
 0x409   :  { %1173 = vsyncpa [#allocation6], 1 }
 0x40a   :  { %1175 = vsyncpa [#allocation6 + $0x1], 1 }
 0x40b   :  { %1176 = vsyncpa [#allocation4], 1 }
 0x40c   :  { %1178 = vsyncpa [#allocation4 + $0x1], 1 }

</bundles_post_ra>
